<compile_context>
chip_gen: v7x
topology: tpu7x:2x2x1
jax: 0.10.0
libtpu: 0.0.40
codegen_flags: <defaults>
</compile_context>

<pallas_src>
import jax
import jax.numpy as jnp
from jax import lax
from jax.experimental import pallas as pl
from jax.experimental.pallas import tpu as pltpu


# ----------------------------------------------------------------------------
# In-kernel helpers
# ----------------------------------------------------------------------------
def _erf(z):
    # Abramowitz & Stegun 7.1.26 rational approximation, |error| <= 1.5e-7.
    # Uses only exp / mul / add / div / select, which lower on every TPU
    # generation (exp goes to the otherwise-idle EUP slot).
    # TODO(synk): replace with lax.erf once its Mosaic lowering is guaranteed
    # on all targeted generations; the approximation error here is negligible.
    a1, a2, a3, a4, a5 = (0.254829592, -0.284496736, 1.421413741,
                          -1.453152027, 1.061405429)
    p = 0.3275911
    az = jnp.abs(z)
    t = 1.0 / (1.0 + p * az)
    poly = ((((a5 * t + a4) * t + a3) * t + a2) * t + a1) * t
    y = 1.0 - poly * jnp.exp(-az * az)
    return jnp.where(z < 0.0, -y, y)


def _gelu_exact(x):
    # Matches torch.nn.GELU() default (approximate='none'):
    #   0.5 * x * (1 + erf(x / sqrt(2)))
    return 0.5 * x * (1.0 + _erf(x * 0.7071067811865476))


def mlp_kernel(x_ref, w1_ref, b1_ref, w2_ref, b2_ref, o_ref):
    """One row tile: fused c_fc -> GELU -> c_proj, entirely in VMEM."""
    x = x_ref[...]                                              # (bm, C)

    # c_fc: x @ W1^T + b1.  W1 is (4C, C) (PyTorch layout); contract dim 1 of x
    # with dim 1 of W1 (trans_b) so no transposed weight copy is materialized.
    h = lax.dot_general(x, w1_ref[...], (((1,), (1,)), ((), ())),
                        preferred_element_type=jnp.float32,
                        precision=lax.Precision.HIGHEST)        # (bm, 4C)
    h = h + b1_ref[...].astype(jnp.float32)
    h = _gelu_exact(h)

    # c_proj: h @ W2^T + b2.  W2 is (C, 4C).
    out = lax.dot_general(h.astype(w2_ref.dtype), w2_ref[...],
                          (((1,), (1,)), ((), ())),
                          preferred_element_type=jnp.float32,
                          precision=lax.Precision.HIGHEST)      # (bm, C)
    out = out + b2_ref[...].astype(jnp.float32)

    # dropout: identity (eval-mode semantics)
    o_ref[...] = out.astype(o_ref.dtype)


# ----------------------------------------------------------------------------
# Wrapper
# ----------------------------------------------------------------------------
def mlp(x, params, *, block_m=256):
    B, T, C = x.shape
    w1 = params["c_fc_w"]       # (4C, C)   PyTorch nn.Linear layout
    b1 = params["c_fc_b"]       # (4C,)
    w2 = params["c_proj_w"]     # (C, 4C)
    b2 = params["c_proj_b"]     # (C,)
    H = w1.shape[0]
    assert w1.shape == (H, C) and w2.shape == (C, H)
    assert b1.shape == (H,) and b2.shape == (C,)

    M = B * T
    xf = x.reshape(M, C)        # contiguous reshape -> free view, no HBM copy
    b1r = b1.reshape(1, H)
    b2r = b2.reshape(1, C)

    # Row tile: either the full extent (small M) or a multiple of 8 sublanes.
    bm = min(block_m, M)
    grid = (pl.cdiv(M, bm),)

    # VMEM working-set estimate: double-buffered x/out tiles, resident weights
    # and biases, plus the in-flight (bm, 4C) hidden tile.  Capped at 48 MiB so
    # the same tiling fits v7x's 64 MiB VMEM as well as v5e/v6e's 128 MiB.
    itemsize = jnp.dtype(x.dtype).itemsize
    est = ((2 * bm * C + 2 * bm * C + H * C * 2 + H + C) * itemsize
           + bm * H * 4)
    vmem_limit = int(min(48 * 1024 * 1024, max(8 * 1024 * 1024, 2 * est)))

    out = pl.pallas_call(
        mlp_kernel,
        out_shape=jax.ShapeDtypeStruct((M, C), x.dtype),
        grid=grid,
        in_specs=[
            pl.BlockSpec((bm, C), lambda i: (i, 0)),   # x row tile
            pl.BlockSpec((H, C), lambda i: (0, 0)),    # W1 (resident)
            pl.BlockSpec((1, H), lambda i: (0, 0)),    # b1 (resident)
            pl.BlockSpec((C, H), lambda i: (0, 0)),    # W2 (resident)
            pl.BlockSpec((1, C), lambda i: (0, 0)),    # b2 (resident)
        ],
        out_specs=pl.BlockSpec((bm, C), lambda i: (i, 0)),
        compiler_params=pltpu.CompilerParams(
            dimension_semantics=("parallel",),
            vmem_limit_bytes=vmem_limit,
        ),
    )(xf, w1, b1r, w2, b2r)

    return out.reshape(B, T, C)


# ----------------------------------------------------------------------------
# Pure-JAX reference (exact erf GELU, like torch.nn.GELU() default)
# ----------------------------------------------------------------------------
def reference(x, params):
    h = jnp.einsum('btc,hc->bth', x, params["c_fc_w"],
                   precision=lax.Precision.HIGHEST) + params["c_fc_b"]
    h = jax.nn.gelu(h, approximate=False)
    y = jnp.einsum('bth,ch->btc', h, params["c_proj_w"],
                   precision=lax.Precision.HIGHEST) + params["c_proj_b"]
    return y   # dropout is identity in eval mode


# ----------------------------------------------------------------------------
if __name__ == "__main__":
    # Small config consistent with the module: n_embd=32 -> hidden 4*n_embd=128
    B, T, n_embd = 2, 8, 32
    H = 4 * n_embd

    key = jax.random.PRNGKey(0)
    k1, k2, k3, k4, k5 = jax.random.split(key, 5)

    params = {
        "c_fc_w":   0.02 * jax.random.normal(k1, (H, n_embd), jnp.float32),
        "c_fc_b":   0.02 * jax.random.normal(k2, (H,), jnp.float32),
        "c_proj_w": 0.02 * jax.random.normal(k3, (n_embd, H), jnp.float32),
        "c_proj_b": 0.02 * jax.random.normal(k4, (n_embd,), jnp.float32),
    }
    x = jax.random.normal(k5, (B, T, n_embd), jnp.float32)

    out = mlp(x, params)
    out = jax.block_until_ready(out)

    ref = reference(x, params)
    assert out.shape == (B, T, n_embd)
    max_diff = float(jnp.max(jnp.abs(out - ref)))
    assert max_diff < 1e-3, f"max abs diff {max_diff}"

    print("KERNEL_OK")
</pallas_src>

<mosaic_0001>
module attributes {stable_mosaic.version = 11 : i64} {
  func.func @mlp_kernel(%arg0: i32, %arg1: memref<16x32xf32, #tpu.memory_space<vmem>>, %arg2: memref<128x32xf32, #tpu.memory_space<vmem>>, %arg3: memref<1x128xf32, #tpu.memory_space<vmem>>, %arg4: memref<32x128xf32, #tpu.memory_space<vmem>>, %arg5: memref<1x32xf32, #tpu.memory_space<vmem>>, %arg6: memref<16x32xf32, #tpu.memory_space<vmem>>) attributes {dimension_semantics = [#tpu.dimension_semantics<parallel>], iteration_bounds = array<i64: 1>, scalar_prefetch = 0 : i64, scratch_operands = 0 : i64, tpu.core_type = #tpu.core_type<tc>, window_params = [{transform_indices = @transform_0, window_bounds = array<i64: 16, 32>}, {pipeline_mode = #tpu.pipeline_mode<synchronous>, transform_indices = @transform_1, window_bounds = array<i64: 128, 32>}, {pipeline_mode = #tpu.pipeline_mode<synchronous>, transform_indices = @transform_2, window_bounds = array<i64: 1, 128>}, {pipeline_mode = #tpu.pipeline_mode<synchronous>, transform_indices = @transform_3, window_bounds = array<i64: 32, 128>}, {pipeline_mode = #tpu.pipeline_mode<synchronous>, transform_indices = @transform_4, window_bounds = array<i64: 1, 32>}, {transform_indices = @transform_5, window_bounds = array<i64: 16, 32>}]} {
    %c0 = arith.constant 0 : index
    %c0_0 = arith.constant 0 : index
    %0 = vector.load %arg1[%c0, %c0_0] : memref<16x32xf32, #tpu.memory_space<vmem>>, vector<16x32xf32>
    %c0_1 = arith.constant 0 : index
    %c0_2 = arith.constant 0 : index
    %1 = vector.load %arg2[%c0_1, %c0_2] : memref<128x32xf32, #tpu.memory_space<vmem>>, vector<128x32xf32>
    %cst = arith.constant dense<0.000000e+00> : vector<16x128xf32>
    %2 = tpu.matmul %0, %1, %cst {dimension_numbers = #tpu.dot_dimension_numbers<[1], [1], [0], [0], [0, 0, 1, 0], [], []>, precision = #tpu.contract_precision<fp32>} : vector<16x32xf32>, vector<128x32xf32>, vector<16x128xf32> -> vector<16x128xf32>
    %c0_3 = arith.constant 0 : index
    %c0_4 = arith.constant 0 : index
    %3 = vector.load %arg3[%c0_3, %c0_4] : memref<1x128xf32, #tpu.memory_space<vmem>>, vector<1x128xf32>
    %4 = vector.broadcast %3 : vector<1x128xf32> to vector<16x128xf32>
    %5 = arith.addf %2, %4 : vector<16x128xf32>
    %cst_5 = arith.constant 5.000000e-01 : f32
    %6 = vector.broadcast %cst_5 : f32 to vector<16x128xf32>
    %7 = arith.mulf %6, %5 : vector<16x128xf32>
    %cst_6 = arith.constant 0.707106769 : f32
    %8 = vector.broadcast %cst_6 : f32 to vector<16x128xf32>
    %9 = arith.mulf %5, %8 : vector<16x128xf32>
    %10 = math.absf %9 : vector<16x128xf32>
    %cst_7 = arith.constant 0.327591091 : f32
    %11 = vector.broadcast %cst_7 : f32 to vector<16x128xf32>
    %12 = arith.mulf %11, %10 : vector<16x128xf32>
    %cst_8 = arith.constant 1.000000e+00 : f32
    %13 = vector.broadcast %cst_8 : f32 to vector<16x128xf32>
    %14 = arith.addf %13, %12 : vector<16x128xf32>
    %cst_9 = arith.constant 1.000000e+00 : f32
    %15 = vector.broadcast %cst_9 : f32 to vector<16x128xf32>
    %16 = arith.divf %15, %14 : vector<16x128xf32>
    %cst_10 = arith.constant 1.06140542 : f32
    %17 = vector.broadcast %cst_10 : f32 to vector<16x128xf32>
    %18 = arith.mulf %17, %16 : vector<16x128xf32>
    %cst_11 = arith.constant -1.45315206 : f32
    %19 = vector.broadcast %cst_11 : f32 to vector<16x128xf32>
    %20 = arith.addf %18, %19 : vector<16x128xf32>
    %21 = arith.mulf %20, %16 : vector<16x128xf32>
    %cst_12 = arith.constant 1.42141378 : f32
    %22 = vector.broadcast %cst_12 : f32 to vector<16x128xf32>
    %23 = arith.addf %21, %22 : vector<16x128xf32>
    %24 = arith.mulf %23, %16 : vector<16x128xf32>
    %cst_13 = arith.constant -0.284496725 : f32
    %25 = vector.broadcast %cst_13 : f32 to vector<16x128xf32>
    %26 = arith.addf %24, %25 : vector<16x128xf32>
    %27 = arith.mulf %26, %16 : vector<16x128xf32>
    %cst_14 = arith.constant 0.254829586 : f32
    %28 = vector.broadcast %cst_14 : f32 to vector<16x128xf32>
    %29 = arith.addf %27, %28 : vector<16x128xf32>
    %30 = arith.mulf %29, %16 : vector<16x128xf32>
    %cst_15 = arith.constant 0.000000e+00 : f32
    %31 = vector.broadcast %cst_15 : f32 to vector<16x128xf32>
    %32 = arith.subf %31, %10 : vector<16x128xf32>
    %33 = arith.mulf %32, %10 : vector<16x128xf32>
    %34 = math.exp %33 : vector<16x128xf32>
    %35 = arith.mulf %30, %34 : vector<16x128xf32>
    %cst_16 = arith.constant 1.000000e+00 : f32
    %36 = vector.broadcast %cst_16 : f32 to vector<16x128xf32>
    %37 = arith.subf %36, %35 : vector<16x128xf32>
    %cst_17 = arith.constant 0.000000e+00 : f32
    %38 = vector.broadcast %cst_17 : f32 to vector<16x128xf32>
    %39 = arith.cmpf olt, %9, %38 : vector<16x128xf32>
    %cst_18 = arith.constant 0.000000e+00 : f32
    %40 = vector.broadcast %cst_18 : f32 to vector<16x128xf32>
    %41 = arith.subf %40, %37 : vector<16x128xf32>
    %42 = arith.select %39, %41, %37 : vector<16x128xi1>, vector<16x128xf32>
    %cst_19 = arith.constant 1.000000e+00 : f32
    %43 = vector.broadcast %cst_19 : f32 to vector<16x128xf32>
    %44 = arith.addf %43, %42 : vector<16x128xf32>
    %45 = arith.mulf %7, %44 : vector<16x128xf32>
    %c0_20 = arith.constant 0 : index
    %c0_21 = arith.constant 0 : index
    %46 = vector.load %arg4[%c0_20, %c0_21] : memref<32x128xf32, #tpu.memory_space<vmem>>, vector<32x128xf32>
    %cst_22 = arith.constant dense<0.000000e+00> : vector<16x32xf32>
    %47 = tpu.matmul %45, %46, %cst_22 {dimension_numbers = #tpu.dot_dimension_numbers<[1], [1], [0], [0], [0, 0, 1, 0], [], []>, precision = #tpu.contract_precision<fp32>} : vector<16x128xf32>, vector<32x128xf32>, vector<16x32xf32> -> vector<16x32xf32>
    %c0_23 = arith.constant 0 : index
    %c0_24 = arith.constant 0 : index
    %48 = vector.load %arg5[%c0_23, %c0_24] : memref<1x32xf32, #tpu.memory_space<vmem>>, vector<1x32xf32>
    %49 = vector.broadcast %48 : vector<1x32xf32> to vector<16x32xf32>
    %50 = arith.addf %47, %49 : vector<16x32xf32>
    %c0_25 = arith.constant 0 : index
    %c0_26 = arith.constant 0 : index
    %51 = vector.load %arg6[%c0_25, %c0_26] : memref<16x32xf32, #tpu.memory_space<vmem>>, vector<16x32xf32>
    tpu.vector_store %arg6[%c0_25, %c0_26], %50 {strides = array<i32>} : memref<16x32xf32, #tpu.memory_space<vmem>>, vector<16x32xf32>,
    return
  }
  func.func @transform_0(%arg0: i32) -> (i32, i32) {
    %c0_i32 = arith.constant 0 : i32
    %c0_i32_0 = arith.constant 0 : i32
    return %arg0, %c0_i32 : i32, i32
  }
  func.func @transform_1(%arg0: i32) -> (i32, i32) {
    %c0_i32 = arith.constant 0 : i32
    %c0_i32_0 = arith.constant 0 : i32
    %c0_i32_1 = arith.constant 0 : i32
    return %c0_i32, %c0_i32_0 : i32, i32
  }
  func.func @transform_2(%arg0: i32) -> (i32, i32) {
    %c0_i32 = arith.constant 0 : i32
    %c0_i32_0 = arith.constant 0 : i32
    %c0_i32_1 = arith.constant 0 : i32
    return %c0_i32, %c0_i32_0 : i32, i32
  }
  func.func @transform_3(%arg0: i32) -> (i32, i32) {
    %c0_i32 = arith.constant 0 : i32
    %c0_i32_0 = arith.constant 0 : i32
    %c0_i32_1 = arith.constant 0 : i32
    return %c0_i32, %c0_i32_0 : i32, i32
  }
  func.func @transform_4(%arg0: i32) -> (i32, i32) {
    %c0_i32 = arith.constant 0 : i32
    %c0_i32_0 = arith.constant 0 : i32
    %c0_i32_1 = arith.constant 0 : i32
    return %c0_i32, %c0_i32_0 : i32, i32
  }
  func.func @transform_5(%arg0: i32) -> (i32, i32) {
    %c0_i32 = arith.constant 0 : i32
    %c0_i32_0 = arith.constant 0 : i32
    return %arg0, %c0_i32 : i32, i32
  }
}

</mosaic_0001>

<bundles_post_ra>
// kernel: tpu_custom_call.1
= control target key start
LH: loop header
LB: loop body
LE: loop exit
PB: predicated region body
PF: predicated region fallthrough
CT: control target
= control target key end

     0   :  { %vm46_vm0 = vcmask 261120   ;;  %s2564_s0 = inlined_call_operand.vmem [shape: f32[16,32], index: 0, kind: input, shape index: {}]   ;;  %s2565_s1 = inlined_call_operand.vmem [shape: f32[128,32], index: 1, kind: input, shape index: {}]   ;;  %s2566_s2 = inlined_call_operand.vmem [shape: f32[1,128], index: 2, kind: input, shape index: {}]   ;;  %s2567_s3 = inlined_call_operand.vmem [shape: f32[32,128], index: 3, kind: input, shape index: {}]   ;;  %s2568_s4 = inlined_call_operand.vmem [shape: f32[1,32], index: 4, kind: input, shape index: {}]   ;;  %s2569_s5 = inlined_call_operand.hbm [shape: f32[16,32], index: 5, kind: output, shape index: {}]  }
   0x1   :  { %v23_v0 = vld [vmem:[%s2565_s1] sm:$0xff]  ;;  %v24_v1 = vld [vmem:[%s2565_s1 + $0x8] sm:$0xff]  ;;  %v25_v2 = vld [vmem:[%s2565_s1 + $0x10] sm:$0xff] }
   0x2   :  { %v54_v3 = vsel %vm46_vm0, %v23_v0, 0  ;;  %v57_v4 = vsel %vm46_vm0, %v24_v1, 0  ;;  %v26_v5 = vld [vmem:[%s2565_s1 + $0x18] sm:$0xff]  ;;  %v60_v6 = vsel %vm46_vm0, %v25_v2, 0  ;;  %v27_v7 = vld [vmem:[%s2565_s1 + $0x20] sm:$0xff]  ;;  %v28_v8 = vld [vmem:[%s2565_s1 + $0x28] sm:$0xff] }
   0x3   :  { %v102_v9 = vand.u32 4294901760, %v54_v3  ;;  %v105_v10 = vand.u32 4294901760, %v57_v4  ;;  %v63_v11 = vsel %vm46_vm0, %v26_v5, 0  ;;  %v108_v12 = vand.u32 4294901760, %v60_v6  ;;  %v29_v26 = vld [vmem:[%s2565_s1 + $0x30] sm:$0xff]  ;;  %v30_v27 = vld [vmem:[%s2565_s1 + $0x38] sm:$0xff] }
   0x4   :  { %v111_v13 = vand.u32 4294901760, %v63_v11  ;;  %v66_v14 = vsel %vm46_vm0, %v27_v7, 0  ;;  %v69_v15 = vsel %vm46_vm0, %v28_v8, 0 }
   0x5   :  { %v2174_v16 = vpack.c.bf16 %v105_v10, %v102_v9  ;;  %v2176_v17 = vsub.f32 %v54_v3, %v102_v9  ;;  %v2178_v18 = vsub.f32 %v57_v4, %v105_v10  ;;  %v2180_v19 = vsub.f32 %v60_v6, %v108_v12 }
   0x6   :  { %v2182_v20 = vpack.c.bf16 %v111_v13, %v108_v12  ;;  %v2184_v21 = vsub.f32 %v63_v11, %v111_v13  ;;  %v114_v23 = vand.u32 4294901760, %v66_v14  ;;  %v117_v24 = vand.u32 4294901760, %v69_v15 }
   0x7   :  { %v1882_v22 = vpack.c.bf16 %v2178_v18, %v2176_v17  ;;  %1819 = vmatprep.subr.bf16.mxu1 %v2174_v16 }
   0x8   :  { %v1886_v25 = vpack.c.bf16 %v2184_v21, %v2180_v19  ;;  %1821 = vmatpush3.bf16.xpose.msra.mxu1 %v2174_v16 }
   0x9   :  { %10 = vsyncpa [#allocation3], 0  ;;  %1883 = vmatprep.subr.bf16.mxu0 %v1882_v22  ;;  %1823 = vmatprep.subr.bf16.mxu1 %v2182_v20  ;;  %v2199_v28 = vsub.f32 %v66_v14, %v114_v23  ;;  %v2201_v29 = vsub.f32 %v69_v15, %v117_v24  ;;  %v72_v30 = vsel %vm46_vm0, %v29_v26, 0  ;;  %v75_v31 = vsel %vm46_vm0, %v30_v27, 0  ;;  %v21_v32 = vld [vmem:[%s2564_s0] sm:$0xff]  ;;  %v32_v39 = vld [vmem:[%s2565_s1 + $0x48] sm:$0xff] }
   0xa   :  { %1885 = vmatpush3.bf16.xpose.msra.mxu0 %v1882_v22  ;;  %v2208_v33 = vpack.c.bf16 %v117_v24, %v114_v23  ;;  %v120_v34 = vand.u32 4294901760, %v72_v30  ;;  %v123_v35 = vand.u32 4294901760, %v75_v31  ;;  %v48_v37 = vsel %vm46_vm0, %v21_v32, 0  ;;  %v31_v38 = vld [vmem:[%s2565_s1 + $0x40] sm:$0xff]  ;;  %v33_v60 = vld [vmem:[%s2565_s1 + $0x50] sm:$0xff]  ;;  %v34_v61 = vld [vmem:[%s2565_s1 + $0x58] sm:$0xff] }
   0xb   :  { %1887 = vmatprep.subr.bf16.mxu0 %v1886_v25  ;;  %v1890_v36 = vpack.c.bf16 %v2201_v29, %v2199_v28  ;;  %v2220_v40 = vand.u32 4294901760, %v48_v37  ;;  %v205_v43 = vand.u32 4294901760, %v2176_v17  ;;  %v212_v44 = vand.u32 4294901760, %v2178_v18  ;;  %v35_v13 = vld [vmem:[%s2565_s1 + $0x60] sm:$0xff]  ;;  %v36_v14 = vld [vmem:[%s2565_s1 + $0x68] sm:$0xff]  ;;  %s2117_s12 = smov [#allocation2]  }
   0xc   :  { %v2223_v41 = vsub.f32 %v72_v30, %v120_v34  ;;  %v2225_v42 = vsub.f32 %v75_v31, %v123_v35  ;;  %v78_v45 = vsel %vm46_vm0, %v31_v38, 0  ;;  %v81_v46 = vsel %vm46_vm0, %v32_v39, 0  ;;  %s1385_s13 = sshll.u32 %s2117_s12, 4  ;;  %s1386_s13 = int_to_ptr.vmem [resolvable:$true] %s1385_s13 }
   0xd   :  { %v2232_v47 = vsub.f32 %v48_v37, %v2220_v40  ;;  %v2238_v48 = vpack.c.bf16 %v212_v44, %v205_v43  ;;  %v2240_v49 = vpack.c.bf16 %v123_v35, %v120_v34  ;;  %v219_v51 = vand.u32 4294901760, %v2180_v19  ;;  %v37_v35 = vld [vmem:[%s2565_s1 + $0x70] sm:$0xff]  ;;  %s2093_s14 = scalar_lea.vmem %s1386_s13, 256  ;;  %p2098_p1 = scmp.lt.s32.totalorder %s1386_s13, %s1386_s13 }
   0xe   :  { %v226_v52 = vand.u32 4294901760, %v2184_v21  ;;  %v1894_v53 = vpack.c.bf16 %v2225_v42, %v2223_v41  ;;  %v126_v54 = vand.u32 4294901760, %v78_v45  ;;  %v129_v55 = vand.u32 4294901760, %v81_v46  ;;  %p2094_p0 = scmp.ne.s32.totalorder %s1386_s13, %s2093_s14  ;;  %p2099_p2 = scmp.lt.s32.totalorder %s2093_s14, %s2093_s14 }
   0xf   :  { %1644 = vmatprep.mubr.f32.mxu0 %v2232_v47  ;;  %v184_v50 = vand.u32 4294901760, %v2232_v47  ;;  %v233_v58 = vand.u32 4294901760, %v2199_v28  ;;  %v240_v59 = vand.u32 4294901760, %v2201_v29  ;;  %v247_v0 = vand.u32 4294901760, %v2223_v41 }
  0x10   :  { %1825 = vmatpush3.bf16.xpose.msra.mxu1 %v2182_v20  ;;  %v2255_v57 = vpack.c.bf16 %v226_v52, %v219_v51  ;;  %v254_v1 = vand.u32 4294901760, %v2225_v42  ;;  %v2275_v2 = vsub.f32 %v78_v45, %v126_v54  ;;  %v2277_v3 = vsub.f32 %v81_v46, %v129_v55  ;;  %p2100_p3 = por %p2099_p2, %p2098_p1 }
  0x11   :  { %1827 = vmatprep.subr.bf16.mxu1 %v2208_v33  ;;  %v185_v56 = vsub.f32 %v2232_v47, %v184_v50  ;;  %v2271_v63 = vpack.c.bf16 %v240_v59, %v233_v58  ;;  %v84_v4 = vsel %vm46_vm0, %v33_v60, 0  ;;  %v87_v5 = vsel %vm46_vm0, %v34_v61, 0  ;;  %v22_v60 = vld [vmem:[%s2564_s0 + $0x8] sm:$0xff] }
  0x12   :  { %1889 = vmatpush3.bf16.xpose.msra.mxu0 %v1886_v25  ;;  %v2285_v6 = vpack.c.bf16 %v254_v1, %v247_v0  ;;  %v2287_v7 = vpack.c.bf16 %v129_v55, %v126_v54  ;;  %v1898_v8 = vpack.c.bf16 %v2277_v3, %v2275_v2  ;;  %v132_v9 = vand.u32 4294901760, %v84_v4  ;;  %p2101_p4 = pnand %p2100_p3, %p2094_p0 }
  0x13   :  { %1891 = vmatprep.subr.bf16.mxu0 %v1890_v36  ;;  %v186_v62 = vand.u32 4294901760, %v185_v56  ;;  %v135_v10 = vand.u32 4294901760, %v87_v5  ;;  %v261_v11 = vand.u32 4294901760, %v2275_v2  ;;  %v268_v12 = vand.u32 4294901760, %v2277_v3 }
  0x14   :  { %v2307_v22 = vsub.f32 %v84_v4, %v132_v9  ;;  %v90_v24 = vsel %vm46_vm0, %v35_v13, 0  ;;  %v93_v25 = vsel %vm46_vm0, %v36_v14, 0  ;;  %v96_v45 = vsel %vm46_vm0, %v37_v35, 0 }
  0x15   :  { %1574 = vmatprep.mubr.f32.mxu1 %v186_v62  ;;  %v2305_v15 = vpack.c.bf16 %v268_v12, %v261_v11  ;;  %v2309_v23 = vsub.f32 %v87_v5, %v135_v10  ;;  %v2313_v26 = vpack.c.bf16 %v135_v10, %v132_v9  ;;  %v138_v30 = vand.u32 4294901760, %v90_v24 }
  0x16   :  { %v141_v31 = vand.u32 4294901760, %v93_v25  ;;  %v275_v32 = vand.u32 4294901760, %v2307_v22  ;;  %v144_v55 = vand.u32 4294901760, %v96_v45  ;;  %v51_v4 = vsel %vm46_vm0, %v22_v60, 0 }
  0x17   :  { %v1902_v27 = vpack.c.bf16 %v2309_v23, %v2307_v22  ;;  %v282_v34 = vand.u32 4294901760, %v2309_v23  ;;  %v2333_v38 = vsub.f32 %v90_v24, %v138_v30  ;;  %v2363_v13 = vand.u32 4294901760, %v51_v4 }
  0x18   :  { %1829 = vmatpush3.bf16.xpose.msra.mxu1 %v2208_v33  ;;  %v2335_v39 = vsub.f32 %v93_v25, %v141_v31  ;;  %v206_v14 = vsub.f32 %v2176_v17, %v205_v43  ;;  %v213_v24 = vsub.f32 %v2178_v18, %v212_v44 }
  0x19   :  { %1831 = vmatprep.subr.bf16.mxu1 %v2240_v49  ;;  %v2331_v37 = vpack.c.bf16 %v282_v34, %v275_v32  ;;  %v289_v61 = vand.u32 4294901760, %v2333_v38 }
  0x1a   :  { %1893 = vmatpush3.bf16.xpose.msra.mxu0 %v1890_v36  ;;  %v38_v36 = vld [vmem:[%s2565_s1 + $0x78] sm:$0xff]  ;;  %v1906_v54 = vpack.c.bf16 %v2335_v39, %v2333_v38  ;;  %v296_v62 = vand.u32 4294901760, %v2335_v39  ;;  %v207_v35 = vand.u32 4294901760, %v206_v14  ;;  %v214_v17 = vand.u32 4294901760, %v213_v24 }
  0x1b   :  { %1895 = vmatprep.subr.bf16.mxu0 %v1894_v53  ;;  %v99_v46 = vsel %vm46_vm0, %v38_v36, 0  ;;  %v220_v36 = vsub.f32 %v2180_v19, %v219_v51  ;;  %v234_v19 = vsub.f32 %v2199_v28, %v233_v58  ;;  %v255_v58 = vsub.f32 %v2225_v42, %v254_v1 }
  0x1c   :  { %v147_v56 = vand.u32 4294901760, %v99_v46  ;;  %v2355_v5 = vpack.c.bf16 %v296_v62, %v289_v61  ;;  %v1850_v44 = vpack.c.bf16 %v214_v17, %v207_v35  ;;  %v276_v14 = vsub.f32 %v2307_v22, %v275_v32 }
  0x1d   :  { %v235_v51 = vand.u32 4294901760, %v234_v19  ;;  %v290_v24 = vsub.f32 %v2333_v38, %v289_v61  ;;  %v297_v22 = vsub.f32 %v2335_v39, %v296_v62  ;;  %v1396_v19 = vld [vmem:[%s2566_s2] ss:$0 sm:$0xff] }
  0x1e   :  { %v2359_v9 = vsub.f32 %v99_v46, %v147_v56  ;;  %v2361_v10 = vpack.c.bf16 %v147_v56, %v144_v55 }
  0x1f   :  { %v298_v32 = vand.u32 4294901760, %v297_v22 }
  0x20   :  { %1833 = vmatpush3.bf16.xpose.msra.mxu1 %v2240_v49 }
  0x21   :  { %1835 = vmatprep.subr.bf16.mxu1 %v2287_v7 }
  0x22   :  { %1897 = vmatpush3.bf16.xpose.msra.mxu0 %v1894_v53  ;;  %v2339_v53 = vpack.c.bf16 %v141_v31, %v138_v30  ;;  %v310_v30 = vand.u32 4294901760, %v2359_v9  ;;  %v2377_v31 = vsub.f32 %v51_v4, %v2363_v13  ;;  %v256_v4 = vand.u32 4294901760, %v255_v58 }
  0x23   :  { %1899 = vmatprep.subr.bf16.mxu0 %v1898_v8 }
  0x24   :  { %v194_v43 = vand.u32 4294901760, %v2377_v31  ;;  %v311_v38 = vsub.f32 %v2359_v9, %v310_v30 }
  0x26   :  { %v195_v46 = vsub.f32 %v2377_v31, %v194_v43  ;;  %v312_v61 = vand.u32 4294901760, %v311_v38 }
  0x28   :  { %1837 = vmatpush3.bf16.xpose.msra.mxu1 %v2287_v7  ;;  %v196_v56 = vand.u32 4294901760, %v195_v46 }
  0x29   :  { %1839 = vmatprep.subr.bf16.mxu1 %v2313_v26 }
  0x2a   :  { %1901 = vmatpush3.bf16.xpose.msra.mxu0 %v1898_v8  ;;  %v2357_v8 = vsub.f32 %v96_v45, %v144_v55  ;;  %v227_v45 = vsub.f32 %v2184_v21, %v226_v52  ;;  %v241_v21 = vsub.f32 %v2201_v29, %v240_v59  ;;  %v248_v29 = vsub.f32 %v2223_v41, %v247_v0 }
  0x2b   :  { %1903 = vmatprep.subr.bf16.mxu0 %v1902_v27  ;;  %v269_v41 = vsub.f32 %v2277_v3, %v268_v12  ;;  %v277_v3 = vand.u32 4294901760, %v276_v14 }
  0x2c   :  { %v1910_v25 = vpack.c.bf16 %v2359_v9, %v2357_v8  ;;  %v228_v55 = vand.u32 4294901760, %v227_v45  ;;  %v242_v52 = vand.u32 4294901760, %v241_v21  ;;  %v249_v59 = vand.u32 4294901760, %v248_v29 }
  0x2d   :  { %v270_v0 = vand.u32 4294901760, %v269_v41 }
  0x2e   :  { %v1858_v28 = vpack.c.bf16 %v242_v52, %v235_v51  ;;  %v1862_v47 = vpack.c.bf16 %v256_v4, %v249_v59 }
  0x30   :  { %1841 = vmatpush3.bf16.xpose.msra.mxu1 %v2313_v26 }
  0x31   :  { %1843 = vmatprep.subr.bf16.mxu1 %v2339_v53 }
  0x32   :  { %1905 = vmatpush3.bf16.xpose.msra.mxu0 %v1902_v27  ;;  %v303_v27 = vand.u32 4294901760, %v2357_v8 }
  0x33   :  { %1907 = vmatprep.subr.bf16.mxu0 %v1906_v54 }
  0x34   :  { %v2384_v18 = vpack.c.bf16 %v310_v30, %v303_v27 }
  0x38   :  { %1845 = vmatpush3.bf16.xpose.msra.mxu1 %v2339_v53 }
  0x39   :  { %1847 = vmatprep.subr.bf16.mxu1 %v2361_v10 }
  0x3a   :  { %1909 = vmatpush3.bf16.xpose.msra.mxu0 %v1906_v54  ;;  %v221_v54 = vand.u32 4294901760, %v220_v36 }
  0x3b   :  { %1911 = vmatprep.subr.bf16.mxu0 %v1910_v25 }
  0x3c   :  { %v1854_v60 = vpack.c.bf16 %v228_v55, %v221_v54 }
  0x40   :  { %1849 = vmatpush3.bf16.xpose.msra.mxu1 %v2361_v10 }
  0x41   :  { %1851 = vmatprep.subr.bf16.mxu1 %v1850_v44 }
  0x42   :  { %1913 = vmatpush3.bf16.xpose.msra.mxu0 %v1910_v25  ;;  %v304_v25 = vsub.f32 %v2357_v8, %v303_v27 }
  0x43   :  { %1915 = vmatprep.subr.bf16.mxu0 %v2174_v16 }
  0x44   :  { %v305_v39 = vand.u32 4294901760, %v304_v25 }
  0x46   :  { %v1878_v62 = vpack.c.bf16 %v312_v61, %v305_v39 }
  0x47   :  { %1575 = vmatmul.mubr.f32.vlgmr.msra.gmra.mrb[0].mxu1 %v196_v56 }
  0x48   :  { %1853 = vmatpush3.bf16.xpose.msra.mxu1 %v1850_v44  ;;  %1609 = vmatprep.mubr.f32.mxu1 %v2220_v40 }
  0x49   :  { %1645 = vmatmul.mubr.f32.vlgmr.msra.gmra.mrb[0].mxu0 %v2377_v31  ;;  %1855 = vmatprep.subr.bf16.mxu1 %v1854_v60 }
  0x4a   :  { %1917 = vmatpush3.bf16.xpose.msra.mxu0 %v2174_v16  ;;  %1679 = vmatprep.mubr.f32.mxu0 %v184_v50  ;;  %v262_v50 = vsub.f32 %v2275_v2, %v261_v11  ;;  %v283_v2 = vsub.f32 %v2309_v23, %v282_v34  ;;  %v291_v23 = vand.u32 4294901760, %v290_v24 }
  0x4b   :  { %1919 = vmatprep.subr.bf16.mxu0 %v2182_v20 }
  0x4c   :  { %v263_v42 = vand.u32 4294901760, %v262_v50  ;;  %v284_v11 = vand.u32 4294901760, %v283_v2  ;;  %v1874_v34 = vpack.c.bf16 %v298_v32, %v291_v23 }
  0x4e   :  { %v1866_v1 = vpack.c.bf16 %v270_v0, %v263_v42  ;;  %v1870_v12 = vpack.c.bf16 %v284_v11, %v277_v3 }
  0x50   :  { %1857 = vmatpush3.bf16.xpose.msra.mxu1 %v1854_v60 }
  0x51   :  { %1859 = vmatprep.subr.bf16.mxu1 %v1858_v28 }
  0x52   :  { %1921 = vmatpush3.bf16.xpose.msra.mxu0 %v2182_v20 }
  0x53   :  { %1923 = vmatprep.subr.bf16.mxu0 %v2208_v33 }
  0x58   :  { %1861 = vmatpush3.bf16.xpose.msra.mxu1 %v1858_v28 }
  0x59   :  { %1863 = vmatprep.subr.bf16.mxu1 %v1862_v47 }
  0x5a   :  { %1925 = vmatpush3.bf16.xpose.msra.mxu0 %v2208_v33 }
  0x5b   :  { %1927 = vmatprep.subr.bf16.mxu0 %v2240_v49 }
  0x60   :  { %1865 = vmatpush3.bf16.xpose.msra.mxu1 %v1862_v47 }
  0x61   :  { %1867 = vmatprep.subr.bf16.mxu1 %v1866_v1 }
  0x62   :  { %1929 = vmatpush3.bf16.xpose.msra.mxu0 %v2240_v49 }
  0x63   :  { %1931 = vmatprep.subr.bf16.mxu0 %v2287_v7 }
  0x68   :  { %1869 = vmatpush3.bf16.xpose.msra.mxu1 %v1866_v1 }
  0x69   :  { %1871 = vmatprep.subr.bf16.mxu1 %v1870_v12 }
  0x6a   :  { %1933 = vmatpush3.bf16.xpose.msra.mxu0 %v2287_v7 }
  0x6b   :  { %1935 = vmatprep.subr.bf16.mxu0 %v2313_v26 }
  0x70   :  { %1873 = vmatpush3.bf16.xpose.msra.mxu1 %v1870_v12 }
  0x71   :  { %1875 = vmatprep.subr.bf16.mxu1 %v1874_v34 }
  0x72   :  { %1937 = vmatpush3.bf16.xpose.msra.mxu0 %v2313_v26 }
  0x73   :  { %1939 = vmatprep.subr.bf16.mxu0 %v2339_v53 }
  0x78   :  { %1877 = vmatpush3.bf16.xpose.msra.mxu1 %v1874_v34 }
  0x79   :  { %1879 = vmatprep.subr.bf16.mxu1 %v1878_v62 }
  0x7a   :  { %1941 = vmatpush3.bf16.xpose.msra.mxu0 %v2339_v53 }
  0x7b   :  { %1943 = vmatprep.subr.bf16.mxu0 %v2361_v10 }
  0x80   :  { %1881 = vmatpush3.bf16.xpose.msra.mxu1 %v1878_v62 }
  0x82   :  { %1945 = vmatpush3.bf16.xpose.msra.mxu0 %v2361_v10 }
  0x83   :  { %1947 = vmatprep.subr.bf16.mxu0 %v2238_v48 }
  0x87   :  { %1610 = vmatmul.mubr.f32.vlgmr.msra.gmra.mrb[0].mxu1 %v2363_v13 }
  0x89   :  { %1680 = vmatmul.mubr.f32.vlgmr.msra.gmra.mrb[0].mxu0 %v194_v43 }
  0x8a   :  { %1949 = vmatpush3.bf16.xpose.msra.mxu0 %v2238_v48  ;;  %1714 = vmatprep.mubr.f32.mxu0 %v2220_v40 }
  0x8b   :  { %1951 = vmatprep.subr.bf16.mxu0 %v2255_v57 }
  0x92   :  { %1953 = vmatpush3.bf16.xpose.msra.mxu0 %v2255_v57 }
  0x93   :  { %1955 = vmatprep.subr.bf16.mxu0 %v2271_v63 }
  0x9a   :  { %1957 = vmatpush3.bf16.xpose.msra.mxu0 %v2271_v63  ;;  %v841_v63 = vld [vmem:[%s2567_s3 + $0x10] sm:$0xff] }
  0x9b   :  { %1959 = vmatprep.subr.bf16.mxu0 %v2285_v6 }
  0xa2   :  { %1961 = vmatpush3.bf16.xpose.msra.mxu0 %v2285_v6  ;;  %v842_v6 = vld [vmem:[%s2567_s3 + $0x18] sm:$0xff] }
  0xa3   :  { %1963 = vmatprep.subr.bf16.mxu0 %v2305_v15 }
  0xaa   :  { %1965 = vmatpush3.bf16.xpose.msra.mxu0 %v2305_v15  ;;  %v860_v15 = vand.u32 4294901760, %v842_v6 }
  0xab   :  { %1967 = vmatprep.subr.bf16.mxu0 %v2331_v37 }
  0xac   :  { %v962_v35 = vsub.f32 %v842_v6, %v860_v15 }
  0xb2   :  { %1969 = vmatpush3.bf16.xpose.msra.mxu0 %v2331_v37 }
  0xb3   :  { %1971 = vmatprep.subr.bf16.mxu0 %v2355_v5 }
  0xba   :  { %1973 = vmatpush3.bf16.xpose.msra.mxu0 %v2355_v5 }
  0xbb   :  { %1975 = vmatprep.subr.bf16.mxu0 %v2384_v18 }
  0xc2   :  { %1977 = vmatpush3.bf16.xpose.msra.mxu0 %v2384_v18  ;;  %v963_v18 = vand.u32 4294901760, %v962_v35 }
  0xc3   :  { %1979 = vmatprep.subr.bf16.mxu0 %v2174_v16 }
  0xc4   :  { %v964_v44 = vsub.f32 %v962_v35, %v963_v18 }
  0xc6   :  { %v965_v45 = vand.u32 4294901760, %v964_v44 }
  0xc9   :  { %1715 = vmatmul.mubr.f32.vlgmr.msra.gmra.mrb[0].mxu0 %v2363_v13 }
  0xca   :  { %1981 = vmatpush3.bf16.xpose.msra.mxu0 %v2174_v16  ;;  %1749 = vmatprep.mubr.f32.mxu0 %v2220_v40  ;;  %v840_v40 = vld [vmem:[%s2567_s3 + $0x8] sm:$0xff] }
  0xcb   :  { %1983 = vmatprep.subr.bf16.mxu0 %v2182_v20 }
  0xd2   :  { %1985 = vmatpush3.bf16.xpose.msra.mxu0 %v2182_v20 }
  0xd3   :  { %1987 = vmatprep.subr.bf16.mxu0 %v2208_v33 }
  0xda   :  { %1989 = vmatpush3.bf16.xpose.msra.mxu0 %v2208_v33  ;;  %v839_v33 = vld [vmem:[%s2567_s3] sm:$0xff] }
  0xdb   :  { %1991 = vmatprep.subr.bf16.mxu0 %v2240_v49  ;;  %v851_v48 = vand.u32 4294901760, %v839_v33 }
  0xdd   :  { %v941_v37 = vsub.f32 %v839_v33, %v851_v48 }
  0xdf   :  { %v942_v5 = vand.u32 4294901760, %v941_v37 }
  0xe1   :  { %v943_v9 = vsub.f32 %v941_v37, %v942_v5 }
  0xe2   :  { %1993 = vmatpush3.bf16.xpose.msra.mxu0 %v2240_v49  ;;  %v854_v49 = vand.u32 4294901760, %v840_v40 }
  0xe3   :  { %1995 = vmatprep.subr.bf16.mxu0 %v2287_v7 }
  0xe4   :  { %v2498_v57 = vpack.c.bf16 %v854_v49, %v851_v48 }
  0xe6   :  { %2011 = vmatprep.subr.bf16.mxu1 %v2498_v57 }
  0xe7   :  { %2013 = vmatpush3.bf16.xpose.msra.mxu1 %v2498_v57 }
  0xea   :  { %1997 = vmatpush3.bf16.xpose.msra.mxu0 %v2287_v7  ;;  %v857_v7 = vand.u32 4294901760, %v841_v63 }
  0xeb   :  { %1999 = vmatprep.subr.bf16.mxu0 %v2313_v26 }
  0xec   :  { %v955_v31 = vsub.f32 %v841_v63, %v857_v7 }
  0xee   :  { %v956_v17 = vand.u32 4294901760, %v955_v31  ;;  %v2519_v55 = vpack.c.bf16 %v962_v35, %v955_v31 }
  0xf0   :  { %v957_v43 = vsub.f32 %v955_v31, %v956_v17  ;;  %v2523_v60 = vpack.c.bf16 %v963_v18, %v956_v17 }
  0xf2   :  { %2001 = vmatpush3.bf16.xpose.msra.mxu0 %v2313_v26  ;;  %v2508_v26 = vpack.c.bf16 %v860_v15, %v857_v7  ;;  %v958_v36 = vand.u32 4294901760, %v957_v43 }
  0xf3   :  { %2003 = vmatprep.subr.bf16.mxu0 %v2339_v53 }
  0xf4   :  { %2015 = vmatprep.subr.bf16.mxu1 %v2508_v26  ;;  %v2515_v46 = vpack.c.bf16 %v965_v45, %v958_v36 }
  0xf5   :  { %2017 = vmatpush3.bf16.xpose.msra.mxu1 %v2508_v26 }
  0xfa   :  { %2005 = vmatpush3.bf16.xpose.msra.mxu0 %v2339_v53  ;;  %v948_v53 = vsub.f32 %v840_v40, %v854_v49 }
  0xfb   :  { %2007 = vmatprep.subr.bf16.mxu0 %v2361_v10 }
  0xfc   :  { %v949_v8 = vand.u32 4294901760, %v948_v53  ;;  %v2517_v54 = vpack.c.bf16 %v948_v53, %v941_v37 }
  0xfe   :  { %v2521_v56 = vpack.c.bf16 %v949_v8, %v942_v5 }
 0x102   :  { %2009 = vmatpush3.bf16.xpose.msra.mxu0 %v2361_v10  ;;  %v950_v10 = vsub.f32 %v948_v53, %v949_v8 }
 0x104   :  { %v951_v27 = vand.u32 4294901760, %v950_v10 }
 0x109   :  { %1750 = vmatmul.mubr.f32.vlgmr.msra.gmra.mrb[0].mxu0 %v2363_v13  ;;  %v944_v13 = vand.u32 4294901760, %v943_v9 }
 0x10b   :  { %v2512_v30 = vpack.c.bf16 %v951_v27, %v944_v13 }
 0x10d   :  { %2019 = vmatprep.subr.bf16.mxu1 %v2512_v30 }
 0x15a   :  { %v1611_v16 = vpop.f32.mrb[0].mxu1 }
 0x15b   :  { %v349_v20 = vpop.f32.mrb[1].mxu1  ;;  %v2058_v21 = vadd.f32 %v1611_v16, %v1396_v19 }
 0x15c   :  { %v2060_v51 = vadd.f32 %v1396_v19, %v349_v20 }
 0x1dc   :  { %v1751_v52 = vpop.f32.mrb[0].mxu0 }
 0x1dd   :  { %v2059_v28 = vadd.f32 %v2058_v21, %v1751_v52  ;;  %v775_v29 = vpop.f32.mrb[1].mxu0 }
 0x1de   :  { %v2061_v58 = vadd.f32 %v2060_v51, %v775_v29 }
 0x1df   :  { %v788_v59 = vmul.f32 0.70710677, %v2059_v28  ;;  %v786_v17 = vmul.f32 0.5, %v2059_v28 }
 0x1e0   :  { %v787_v4 = vmul.f32 0.70710677, %v2061_v58  ;;  %v785_v44 = vmul.f32 0.5, %v2061_v58 }
 0x1e1   :  { %v790_v47 = vand.u32 2147483647, %v788_v59  ;;  %vm830_vm1 = vcmp.lt.f32.partialorder %v788_v59, 0.0 }
 0x1e2   :  { %v789_v50 = vand.u32 2147483647, %v787_v4  ;;  %vm829_vm2 = vcmp.lt.f32.partialorder %v787_v4, 0.0 }
 0x1e3   :  { %v792_v41 = vmul.f32 0.3275911, %v790_v47  ;;  %v818_v14 = vsub.f32 0.0, %v790_v47 }
 0x1e4   :  { %v791_v42 = vmul.f32 0.3275911, %v789_v50  ;;  %v817_v2 = vsub.f32 0.0, %v789_v50 }
 0x1e5   :  { %v794_v0 = vadd.f32 1.0, %v792_v41  ;;  %v820_v11 = vmul.f32 %v818_v14, %v790_v47 }
 0x1e6   :  { %v793_v1 = vadd.f32 1.0, %v791_v42  ;;  %v819_v22 = vmul.f32 %v817_v2, %v789_v50 }
 0x1e7   :  { %2085 = vrcp.f32 %v794_v0  ;;  %v823_v34 = vmul.f32 1.442695, %v820_v11 }
 0x1e8   :  { %2087 = vrcp.f32 %v793_v1  ;;  %v821_v39 = vmul.f32 1.442695, %v819_v22 }
 0x1e9   :  { %2089 = vpow2.f32 %v823_v34 }
 0x1ea   :  { %2091 = vpow2.f32 %v821_v39 }
 0x1f1   :  { %v2086_v3 = vpop.eup %2085 }
 0x1f2   :  { %v2088_v12 = vpop.eup %2087  ;;  %v800_v24 = vmul.f32 1.0614054, %v2086_v3 }
 0x1f3   :  { %v799_v23 = vmul.f32 1.0614054, %v2088_v12  ;;  %v2090_v37 = vpop.eup %2089 }
 0x1f4   :  { %v802_v32 = vadd.f32 -1.4531521, %v800_v24  ;;  %v2092_v5 = vpop.eup %2091 }
 0x1f5   :  { %v801_v25 = vadd.f32 -1.4531521, %v799_v23 }
 0x1f6   :  { %v804_v38 = vmul.f32 %v2086_v3, %v802_v32 }
 0x1f7   :  { %v803_v61 = vmul.f32 %v2088_v12, %v801_v25 }
 0x1f8   :  { %v806_v62 = vadd.f32 1.4214138, %v804_v38 }
 0x1f9   :  { %v805_v16 = vadd.f32 1.4214138, %v803_v61 }
 0x1fa   :  { %v808_v20 = vmul.f32 %v2086_v3, %v806_v62 }
 0x1fb   :  { %v807_v33 = vmul.f32 %v2088_v12, %v805_v16 }
 0x1fc   :  { %v810_v40 = vadd.f32 -0.28449672, %v808_v20 }
 0x1fd   :  { %v809_v48 = vadd.f32 -0.28449672, %v807_v33 }
 0x1fe   :  { %v812_v49 = vmul.f32 %v2086_v3, %v810_v40 }
 0x1ff   :  { %v811_v63 = vmul.f32 %v2088_v12, %v809_v48 }
 0x200   :  { %v814_v6 = vadd.f32 0.2548296, %v812_v49 }
 0x201   :  { %v813_v7 = vadd.f32 0.2548296, %v811_v63 }
 0x202   :  { %v816_v15 = vmul.f32 %v2086_v3, %v814_v6 }
 0x203   :  { %v815_v53 = vmul.f32 %v2088_v12, %v813_v7 }
 0x204   :  { %v826_v8 = vmul.f32 %v2090_v37, %v816_v15 }
 0x205   :  { %v825_v9 = vmul.f32 %v2092_v5, %v815_v53 }
 0x206   :  { %v828_v10 = vsub.f32 1.0, %v826_v8 }
 0x207   :  { %v827_v13 = vsub.f32 1.0, %v825_v9 }
 0x208   :  { %v832_v27 = vsub.f32 0.0, %v828_v10 }
 0x209   :  { %v831_v31 = vsub.f32 0.0, %v827_v13 }
 0x20a   :  { %v834_v35 = vsel %vm830_vm1, %v832_v27, %v828_v10 }
 0x20b   :  { %v836_v18 = vadd.f32 1.0, %v834_v35  ;;  %v833_v43 = vsel %vm829_vm2, %v831_v31, %v827_v13 }
 0x20c   :  { %v835_v36 = vadd.f32 1.0, %v833_v43 }
 0x20d   :  { %v838_v45 = vmul.f32 %v836_v18, %v786_v17 }
 0x20e   :  { %v837_v19 = vmul.f32 %v835_v36, %v785_v44 }
 0x20f   :  { %v929_v21 = vand.u32 4294901760, %v838_v45 }
 0x210   :  { %v919_v51 = vand.u32 4294901760, %v837_v19 }
 0x211   :  { %v930_v52 = vsub.f32 %v838_v45, %v929_v21 }
 0x212   :  { %v920_v29 = vsub.f32 %v837_v19, %v919_v51 }
 0x213   :  { %v931_v47 = vand.u32 4294901760, %v930_v52 }
 0x214   :  { %v921_v50 = vand.u32 4294901760, %v920_v29 }
 0x215   :  { %v932_v41 = vsub.f32 %v930_v52, %v931_v47 }
 0x216   :  { %v922_v42 = vsub.f32 %v920_v29, %v921_v50 }
 0x217   :  { %v933_v59 = vand.u32 4294901760, %v932_v41 }
 0x218   :  { %v923_v0 = vand.u32 4294901760, %v922_v42 }
 0x21a   :  { %1760 = vmatprep.mubr.f32.mxu1 %v923_v0 }
 0x21b   :  { %1761 = vmatmul.mubr.f32.vlgmr.msra.gmra.mrb[2].mxu1 %v933_v59 }
 0x21c   :  { %2021 = vmatpush3.bf16.xpose.msra.mxu1 %v2512_v30  ;;  %1771 = vmatprep.mubr.f32.mxu1 %v919_v51  ;;  %v1397_v30 = vld [vmem:[%s2568_s4] ss:$0 sm:$0xff] }
 0x21d   :  { %2023 = vmatprep.subr.bf16.mxu1 %v2515_v46 }
 0x224   :  { %2025 = vmatpush3.bf16.xpose.msra.mxu1 %v2515_v46 }
 0x225   :  { %2027 = vmatprep.subr.bf16.mxu1 %v2517_v54 }
 0x22b   :  { %1772 = vmatmul.mubr.f32.vlgmr.msra.gmra.mrb[2].mxu1 %v929_v21 }
 0x22c   :  { %2029 = vmatpush3.bf16.xpose.msra.mxu1 %v2517_v54  ;;  %1782 = vmatprep.mubr.f32.mxu1 %v920_v29 }
 0x22d   :  { %2031 = vmatprep.subr.bf16.mxu1 %v2519_v55 }
 0x234   :  { %2033 = vmatpush3.bf16.xpose.msra.mxu1 %v2519_v55 }
 0x235   :  { %2035 = vmatprep.subr.bf16.mxu1 %v2498_v57 }
 0x23b   :  { %1783 = vmatmul.mubr.f32.vlgmr.msra.gmra.mrb[2].mxu1 %v930_v52 }
 0x23c   :  { %2037 = vmatpush3.bf16.xpose.msra.mxu1 %v2498_v57  ;;  %1793 = vmatprep.mubr.f32.mxu1 %v921_v50 }
 0x23d   :  { %2039 = vmatprep.subr.bf16.mxu1 %v2508_v26 }
 0x244   :  { %2041 = vmatpush3.bf16.xpose.msra.mxu1 %v2508_v26 }
 0x245   :  { %2043 = vmatprep.subr.bf16.mxu1 %v2521_v56 }
 0x24b   :  { %1794 = vmatmul.mubr.f32.vlgmr.msra.gmra.mrb[2].mxu1 %v931_v47 }
 0x24c   :  { %2045 = vmatpush3.bf16.xpose.msra.mxu1 %v2521_v56  ;;  %1804 = vmatprep.mubr.f32.mxu1 %v919_v51 }
 0x24d   :  { %2047 = vmatprep.subr.bf16.mxu1 %v2523_v60 }
 0x254   :  { %2049 = vmatpush3.bf16.xpose.msra.mxu1 %v2523_v60 }
 0x255   :  { %2051 = vmatprep.subr.bf16.mxu1 %v2498_v57 }
 0x25b   :  { %1805 = vmatmul.mubr.f32.vlgmr.msra.gmra.mrb[2].mxu1 %v929_v21 }
 0x25c   :  { %2053 = vmatpush3.bf16.xpose.msra.mxu1 %v2498_v57  ;;  %1815 = vmatprep.mubr.f32.mxu1 %v919_v51 }
 0x25d   :  { %2055 = vmatprep.subr.bf16.mxu1 %v2508_v26 }
 0x264   :  { %2057 = vmatpush3.bf16.xpose.msra.mxu1 %v2508_v26 }
 0x26b   :  { %1816 = vmatmul.mubr.f32.vlgmr.msra.gmra.mrb[2].mxu1 %v929_v21 }
 0x33e   :  { %v1817_v46 = vpop.f32.mrb[2].mxu1 }
 0x33f   :  { %v2062_v54 = vadd.f32 %v1817_v46, %v1397_v30  ;;  %v1368_v55 = vpop.f32.mrb[3].mxu1 }
 0x340   :  { %v2063_v56 = vadd.f32 %v1397_v30, %v1368_v55 }
 0x341   :  { %1379 = vst.msk [vmem:[#allocation2 + $0x8] sm:$0xff] %vm46_vm0, %v2062_v54 }
 0x342   :  { %1378 = vst.msk [vmem:[#allocation2] sm:$0xff] %vm46_vm0, %v2063_v56 }
 0x343   :  { %2104 = shalt.err (!%p2101_p4)
}
 0x344   :  { %s2105_s16 = scalar_lea.hbm %s2569_s5, 256 }
 0x345   :  { %p2106_p5 = scmp.ne.s32.totalorder %s2569_s5, %s2105_s16  ;;  %p2109_p6 = scmp.lt.u32.totalorder %s2105_s16, %s2569_s5 }
 0x347   :  { %p2111_p7 = pnand %p2109_p6, %p2106_p5 }
 0x349   :  { %2114 = shalt.err (!%p2111_p7)
}
 0x34a   :  { %s2118_s21 = smov 128   ;;  %s2119_s22 = smov 8  }
 0x34b   :  { %1391 = dma.vmem_to_hbm [thread:$0]  %s1386_s13, 256, %s2569_s5, [#allocation3], %s2118_s21, %s2118_s21, %s2119_s22  }
 0x34c   :  { %2115 = dma.done.wait [#allocation3], 256  }
 0x34d   :  { %2116 = vsyncadd [#allocation3], 4294967040 }
 0x34e   :  { %1395 = vsyncpa [#allocation3], 1 }

</bundles_post_ra>
